<compile_context>
chip_gen: v5e
topology: v5e:2x2
jax: 0.10.0
libtpu: 0.0.40
codegen_flags: <defaults>
</compile_context>

<pallas_src>
import jax
import jax.numpy as jnp
from jax.experimental import pallas as pl
from jax.experimental.pallas import tpu as pltpu

_MIB = 1024 * 1024


def zero_conv1d_kernel(x_ref, w_ref, b_ref, o_ref, acc_ref):
    # x_ref: (1, ck, TL)  w_ref: (C_out, ck)  b_ref: (C_out, 1)
    # o_ref: (1, C_out, TL)  acc_ref: (C_out, TL) f32 scratch
    k = pl.program_id(2)

    @pl.when(k == 0)
    def _init():
        acc_ref[...] = jnp.zeros_like(acc_ref)

    acc_ref[...] += jnp.dot(w_ref[...], x_ref[0],
                            preferred_element_type=jnp.float32)

    @pl.when(k == pl.num_programs(2) - 1)
    def _finalize():
        o_ref[0] = (acc_ref[...] + b_ref[...]).astype(o_ref.dtype)


def _round_up(n, m):
    return ((n + m - 1) // m) * m


def _vmem_params():
    """(tile budget, vmem_limit_bytes) chosen per TPU generation."""
    phys = 64 * _MIB  # conservative default (v7x-sized) if the query fails
    try:
        info = pltpu.get_tpu_info()
        phys = int(getattr(info, "vmem_capacity_bytes", phys)) or phys
    except Exception:
        pass
    if phys >= 100 * _MIB:          # v5e / v6e: 128 MiB physical VMEM
        return 48 * _MIB, 80 * _MIB
    return 32 * _MIB, 48 * _MIB     # v7x: 64 MiB physical VMEM


def _footprint_bytes(ck, c_out, tl, itemsize):
    """Resident VMEM for one pipeline stage: everything, not just x/out."""
    x_blk = 2 * ck * tl * itemsize          # double-buffered input tile
    o_blk = 2 * c_out * tl * itemsize       # double-buffered output tile
    w_blk = 2 * c_out * ck * itemsize       # weight tile (double-buffered)
    b_blk = 2 * c_out * 4                   # f32 bias
    acc = c_out * tl * 4                    # f32 accumulator scratch
    return x_blk + o_blk + w_blk + b_blk + acc


def _choose_c_in_tile(c_in, c_out, itemsize, budget):
    # Only split when C_in is a multiple of 128 (BlockSpec lane rule on the weight's last
    # dim); small C_in never needs splitting.
    if c_in <= 256 or c_in % 128 != 0:
        return c_in
    for ck in range(c_in, 0, -128):
        if c_in % ck:
            continue
        if _footprint_bytes(ck, c_out, 512, itemsize) <= budget:
            return ck
    return 128


def _choose_length_tile(ck, c_out, l_pad128, itemsize, budget, cap=8192):
    tl_hi = min(cap, l_pad128)
    fixed = 2 * c_out * ck * itemsize + 2 * c_out * 4            # weight bufs + bias
    per_col = 2 * (ck + c_out) * itemsize + c_out * 4            # x + out bufs + f32 acc
    tl_max = (budget - fixed) // max(per_col, 1)
    tl_max = max(128, min((tl_max // 128) * 128, tl_hi))
    # Largest 128-multiple divisor of l_pad128 not exceeding tl_max -> zero extra padding.
    tl_div = 128
    t = tl_max
    while t >= 128:
        if l_pad128 % t == 0:
            tl_div = t
            break
        t -= 128
    # Prefer the padding-free divisor unless it is much smaller than the budget-optimal
    # tile (then a little padding beats tiny, overhead-dominated grid steps).
    return tl_div if 4 * tl_div >= tl_max else tl_max


def zero_conv1d(x, weight, bias, *, length_tile=None, c_in_tile=None):
    """x: (B, C_in, L); weight: (C_out, C_in, 1) (PyTorch Conv1d layout); bias: (C_out,)."""
    B, C_in, L = x.shape
    C_out = weight.shape[0]

    # Glue: drop the kernel_size=1 axis; keep the model dtype on the matmul operands
    # (bf16 stays bf16 -> half the HBM bytes on a bandwidth-bound op). Bias joins in f32.
    w2d = weight.reshape(C_out, C_in).astype(x.dtype)
    b2d = bias.reshape(C_out, 1).astype(jnp.float32)
    itemsize = jnp.dtype(x.dtype).itemsize

    budget, vmem_limit = _vmem_params()
    l_pad128 = _round_up(L, 128)

    # --- C_in (reduction) tiling ---
    if c_in_tile is None:
        ck = _choose_c_in_tile(C_in, C_out, itemsize, budget)
    else:
        ck = int(c_in_tile)
        if ck != C_in and (C_in % ck != 0 or ck % 128 != 0):
            raise ValueError("c_in_tile must equal C_in or be a 128-multiple divisor of C_in")
    n_k = C_in // ck
    assert n_k * ck == C_in

    # --- length tiling ---
    if length_tile is None:
        tl = _choose_length_tile(ck, C_out, l_pad128, itemsize, budget)
    else:
        # Validate the override: 128-multiple, clamped to the padded length.
        tl = max(128, min(_round_up(int(length_tile), 128), l_pad128))

    L_pad = _round_up(l_pad128, tl)
    if L_pad != L:
        x = jnp.pad(x, ((0, 0), (0, 0), (0, L_pad - L)))

    grid = (B, L_pad // tl, n_k)

    cost = pl.CostEstimate(
        flops=2 * B * C_out * C_in * L_pad,
        transcendentals=0,
        bytes_accessed=(B * C_in * L_pad + B * C_out * L_pad) * itemsize
        + C_out * C_in * itemsize + C_out * 4,
    )

    out = pl.pallas_call(
        zero_conv1d_kernel,
        out_shape=jax.ShapeDtypeStruct((B, C_out, L_pad), x.dtype),
        grid_spec=pltpu.PrefetchScalarGridSpec(
            num_scalar_prefetch=0,
            grid=grid,
            in_specs=[
                pl.BlockSpec((1, ck, tl), lambda b, l, k: (b, k, l)),
                pl.BlockSpec((C_out, ck), lambda b, l, k: (0, k)),
                pl.BlockSpec((C_out, 1), lambda b, l, k: (0, 0)),
            ],
            out_specs=pl.BlockSpec((1, C_out, tl), lambda b, l, k: (b, 0, l)),
            scratch_shapes=[pltpu.VMEM((C_out, tl), jnp.float32)],
        ),
        compiler_params=pltpu.CompilerParams(
            dimension_semantics=("parallel", "parallel", "arbitrary"),
            vmem_limit_bytes=vmem_limit,
        ),
        cost_estimate=cost,
    )(x, w2d, b2d)

    if L_pad != L:
        out = out[:, :, :L]
    return out


if __name__ == "__main__":
    key = jax.random.PRNGKey(0)
    kx, kw, kb, kx2, kw2, kb2 = jax.random.split(key, 6)

    # 1) Small shapes implied by the module (B=2, C_in=4, C_out=6, L=16), non-trivial params.
    #    Integer-valued data keeps the MXU path bit-exact vs. the XLA einsum reference.
    B, C_in, C_out, L = 2, 4, 6, 16
    x = jnp.round(3.0 * jax.random.normal(kx, (B, C_in, L))).astype(jnp.float32)
    w = jnp.round(3.0 * jax.random.normal(kw, (C_out, C_in, 1))).astype(jnp.float32)
    b = jax.random.normal(kb, (C_out,), dtype=jnp.float32)

    out = jax.block_until_ready(zero_conv1d(x, w, b))
    ref = jnp.einsum("oi,bil->bol", w[:, :, 0], x) + b[None, :, None]
    assert out.shape == (B, C_out, L), out.shape
    assert jnp.allclose(out, ref, atol=1e-5, rtol=1e-5), "mismatch vs reference (random params)"

    # 2) ZeroConv1d init semantics: zero weight & bias -> exactly zero output.
    out0 = jax.block_until_ready(zero_conv1d(x, jnp.zeros_like(w), jnp.zeros_like(b)))
    assert jnp.all(out0 == 0.0), "zero-init path must output zeros"

    # 3) Exercise the C_in-split accumulator path (n_k=2) and a non-128-aligned length.
    B2, C_in2, C_out2, L2 = 2, 256, 128, 200
    x2 = jnp.round(2.0 * jax.random.normal(kx2, (B2, C_in2, L2))).astype(jnp.float32)
    w2 = jnp.round(2.0 * jax.random.normal(kw2, (C_out2, C_in2, 1))).astype(jnp.float32)
    b2 = jax.random.normal(kb2, (C_out2,), dtype=jnp.float32)
    out2 = jax.block_until_ready(zero_conv1d(x2, w2, b2, c_in_tile=128))
    ref2 = jnp.einsum("oi,bil->bol", w2[:, :, 0], x2) + b2[None, :, None]
    assert out2.shape == (B2, C_out2, L2), out2.shape
    assert jnp.allclose(out2, ref2, atol=1e-3, rtol=1e-3), "mismatch vs reference (K-split path)"

    print("KERNEL_OK")
</pallas_src>

<mosaic_0001>
module attributes {stable_mosaic.version = 11 : i64} {
  func.func @zero_conv1d_kernel(%arg0: i32, %arg1: i32, %arg2: i32, %arg3: memref<1x4x128xf32, #tpu.memory_space<vmem>>, %arg4: memref<6x4xf32, #tpu.memory_space<vmem>>, %arg5: memref<6x1xf32, #tpu.memory_space<vmem>>, %arg6: memref<1x6x128xf32, #tpu.memory_space<vmem>>, %arg7: memref<6x128xf32, #tpu.memory_space<vmem>>) attributes {dimension_semantics = [#tpu.dimension_semantics<parallel>, #tpu.dimension_semantics<parallel>, #tpu.dimension_semantics<arbitrary>], iteration_bounds = array<i64: 2, 1, 1>, scalar_prefetch = 0 : i64, scratch_operands = 1 : i64, tpu.core_type = #tpu.core_type<tc>, window_params = [{transform_indices = @transform_0, window_bounds = array<i64: 1, 4, 128>}, {transform_indices = @transform_1, window_bounds = array<i64: 6, 4>}, {pipeline_mode = #tpu.pipeline_mode<synchronous>, transform_indices = @transform_2, window_bounds = array<i64: 6, 1>}, {transform_indices = @transform_3, window_bounds = array<i64: 1, 6, 128>}]} {
    %c0_i32 = arith.constant 0 : i32
    %0 = arith.cmpi eq, %arg2, %c0_i32 : i32
    %1 = arith.extui %0 : i1 to i32
    %c0_i32_0 = arith.constant 0 : i32
    %2 = arith.cmpi ne, %1, %c0_i32_0 : i32
    scf.if %2 {
      %cst_11 = arith.constant 0.000000e+00 : f32
      %13 = vector.broadcast %cst_11 : f32 to vector<6x128xf32>
      %c0_12 = arith.constant 0 : index
      %c0_13 = arith.constant 0 : index
      %14 = vector.load %arg7[%c0_12, %c0_13] : memref<6x128xf32, #tpu.memory_space<vmem>>, vector<6x128xf32>
      tpu.vector_store %arg7[%c0_12, %c0_13], %13 {strides = array<i32>} : memref<6x128xf32, #tpu.memory_space<vmem>>, vector<6x128xf32>,
    } else {
    }
    %c0 = arith.constant 0 : index
    %c0_1 = arith.constant 0 : index
    %3 = vector.load %arg7[%c0, %c0_1] : memref<6x128xf32, #tpu.memory_space<vmem>>, vector<6x128xf32>
    %c0_2 = arith.constant 0 : index
    %c0_3 = arith.constant 0 : index
    %4 = vector.load %arg4[%c0_2, %c0_3] : memref<6x4xf32, #tpu.memory_space<vmem>>, vector<6x4xf32>
    %c0_4 = arith.constant 0 : index
    %c0_5 = arith.constant 0 : index
    %c0_6 = arith.constant 0 : index
    %5 = vector.load %arg3[%c0_4, %c0_5, %c0_6] : memref<1x4x128xf32, #tpu.memory_space<vmem>>, vector<1x4x128xf32>
    %6 = vector.shape_cast %5 : vector<1x4x128xf32> to vector<4x128xf32>
    %cst = arith.constant dense<0.000000e+00> : vector<6x128xf32>
    %7 = tpu.matmul %4, %6, %cst {dimension_numbers = #tpu.dot_dimension_numbers<[1], [0], [0], [1], [0, 0, 1, 1], [], []>} : vector<6x4xf32>, vector<4x128xf32>, vector<6x128xf32> -> vector<6x128xf32>
    %8 = arith.addf %3, %7 : vector<6x128xf32>
    %c0_7 = arith.constant 0 : index
    %c0_8 = arith.constant 0 : index
    %9 = vector.load %arg7[%c0_7, %c0_8] : memref<6x128xf32, #tpu.memory_space<vmem>>, vector<6x128xf32>
    tpu.vector_store %arg7[%c0_7, %c0_8], %8 {strides = array<i32>} : memref<6x128xf32, #tpu.memory_space<vmem>>, vector<6x128xf32>,
    %c0_i32_9 = arith.constant 0 : i32
    %10 = arith.cmpi eq, %arg2, %c0_i32_9 : i32
    %11 = arith.extui %10 : i1 to i32
    %c0_i32_10 = arith.constant 0 : i32
    %12 = arith.cmpi ne, %11, %c0_i32_10 : i32
    scf.if %12 {
      %c0_11 = arith.constant 0 : index
      %c0_12 = arith.constant 0 : index
      %13 = vector.load %arg7[%c0_11, %c0_12] : memref<6x128xf32, #tpu.memory_space<vmem>>, vector<6x128xf32>
      %c0_13 = arith.constant 0 : index
      %c0_14 = arith.constant 0 : index
      %14 = vector.load %arg5[%c0_13, %c0_14] : memref<6x1xf32, #tpu.memory_space<vmem>>, vector<6x1xf32>
      %15 = vector.broadcast %14 : vector<6x1xf32> to vector<6x128xf32>
      %16 = arith.addf %13, %15 : vector<6x128xf32>
      %c0_15 = arith.constant 0 : index
      %c0_16 = arith.constant 0 : index
      %c0_17 = arith.constant 0 : index
      %17 = vector.load %arg6[%c0_15, %c0_16, %c0_17] : memref<1x6x128xf32, #tpu.memory_space<vmem>>, vector<1x6x128xf32>
      %18 = vector.shape_cast %17 : vector<1x6x128xf32> to vector<6x128xf32>
      %19 = vector.shape_cast %16 : vector<6x128xf32> to vector<1x6x128xf32>
      tpu.vector_store %arg6[%c0_15, %c0_16, %c0_17], %19 {strides = array<i32>} : memref<1x6x128xf32, #tpu.memory_space<vmem>>, vector<1x6x128xf32>,
    } else {
    }
    return
  }
  func.func @transform_0(%arg0: i32, %arg1: i32, %arg2: i32) -> (i32, i32, i32) {
    %c0_i32 = arith.constant 0 : i32
    return %arg0, %arg2, %arg1 : i32, i32, i32
  }
  func.func @transform_1(%arg0: i32, %arg1: i32, %arg2: i32) -> (i32, i32) {
    %c0_i32 = arith.constant 0 : i32
    %c0_i32_0 = arith.constant 0 : i32
    return %c0_i32, %arg2 : i32, i32
  }
  func.func @transform_2(%arg0: i32, %arg1: i32, %arg2: i32) -> (i32, i32) {
    %c0_i32 = arith.constant 0 : i32
    %c0_i32_0 = arith.constant 0 : i32
    %c0_i32_1 = arith.constant 0 : i32
    return %c0_i32, %c0_i32_0 : i32, i32
  }
  func.func @transform_3(%arg0: i32, %arg1: i32, %arg2: i32) -> (i32, i32, i32) {
    %c0_i32 = arith.constant 0 : i32
    %c0_i32_0 = arith.constant 0 : i32
    return %arg0, %c0_i32, %arg1 : i32, i32, i32
  }
}

</mosaic_0001>

<bundles_post_ra>
// kernel: tpu_custom_call.1
= control target key start
LH: loop header
LB: loop body
LE: loop exit
PB: predicated region body
PF: predicated region fallthrough
CT: control target
= control target key end

     0   :  { %s463_s12 = smov 0   ;;  %s465_s13 = smov 0   ;;  %s502_s0 = inlined_call_operand.vmem [shape: f32[2,4,128], index: 0, kind: input, shape index: {}]   ;;  %s503_s1 = inlined_call_operand.vmem [shape: f32[6,4], index: 1, kind: input, shape index: {}]   ;;  %s504_s2 = inlined_call_operand.vmem [shape: f32[6,1], index: 2, kind: input, shape index: {}]   ;;  %s505_s3 = inlined_call_operand.vmem [shape: f32[2,6,128], index: 3, kind: output, shape index: {}]  }
   0x1   :  { %s467_s14 = smov 0  }
   0x2 LB: > { %s32_s15 = sadd.s32 1, %s435_s13  ;;  %p383_p0 = scmp.ge.s32.totalorder %s439_s14, 1  ;;  %s439_s14 = sphi %s467_s14, %s13_s14   ;;  %s435_s13 = sphi %s465_s13, %s507_s13   ;;  %s431_s12 = sphi %s463_s12, %s506_s12  }
   0x3   : > { %p34_p1 = scmp.ge.s32.totalorder %s32_s15, 2  ;;  %p176_p2 = scmp.lt.s32.totalorder %s439_s14, 3 }
   0x5   : > { %s509_s15 = smov (%p34_p1, %s32_s15), 0  ;;  %p177_p3 = pnand %p383_p0, %p176_p2 }
   0x6   : > { %p211_p4 = scmp.lt.s32.totalorder (!%p177_p3), %s431_s12, 1 }
   0x7   : > { %180 = sbr.rel (%p177_p3) target bundleno = 156 (0x9c), region = 32 }
   0xc   : > { %v441_v0 = vmov 0   ;;  %v274_v1 = vld [vmem:[%s504_s2] sm:$0x3f]  ;;  %s511_s12 = smov (!%p211_p4, %s431_s12), 1  ;;  %v442_v2 = vmov 0.0   ;;  %vm244_vm0 = vcmask 1043456  }
   0xd   : > { %416 = vset.pattern.permute.xlu0 %v441_v0  ;;  %236 = vst [vmem:[#allocation2] sm:$0x3f] %v442_v2  ;;  %s384_s18 = sshll.u32 %s511_s12, 2  ;;  %v238_v3 = vld [vmem:[%s503_s1] sm:$0x3f]  ;;  %vm240_vm1 = vcmask 31744  }
   0xe   : > { %277 = vperm.xlu0 %416, %v274_v1   ;;  %s220_s21 = scalar_lea.vmem %s502_s0, %s384_s18  ;;  %s385_s24 = sshll.u32 %s511_s12, 3 }
   0xf   : > { %v239_v4 = vld [vmem:[%s220_s21] sm:$0xf]  ;;  %s231_s27 = scalar_lea.vmem %s505_s3, %s385_s24 }
  0x10   : > { %386 = vmatpush.msk.msra.mxu0 %vm244_vm0, %v239_v4 }
  0x11   : > { %387 = vmatmul.msk.f32.vlgmr.msra.gmra.mxu0 %vm240_vm1, %v238_v3 }
  0x14   : > { %v237_v5 = vld [vmem:[#allocation2] sm:$0x3f] }
  0x80   : > { %v278_v8 = vpop.permute.xlu0 %277 }
  0x8e   : > { %v265_v6 = vpop.f32.mrf.mxu0 }
  0x8f   : > { %v268_v7 = vadd.f32 %v265_v6, %v237_v5 }
  0x91   : > { %269 = vst [vmem:[#allocation2] sm:$0x3f] %v268_v7 }
  0x98   : > { %v273_v9 = vld [vmem:[#allocation2] sm:$0x3f] }
  0x99   : > { %v280_v10 = vadd.f32 %v278_v8, %v273_v9 }
  0x9b   : > { %281 = vst [vmem:[%s231_s27] sm:$0x3f] %v280_v10 }
  0x9c PF: > { %s13_s14 = sadd.s32 1, %s439_s14   ;;  %s506_s12 = smov %s435_s13 }
  0x9d   : > { %p10_p5 = scmp.ge.s32.totalorder %s13_s14, 4   ;;  %s507_s13 = smov %s509_s15 }
  0x9f   :  { %12 = sbr.rel (!%p10_p5) target bundleno = 2 (0x2), region = 73 }

</bundles_post_ra>
